<compile_context>
chip_gen: v5e
topology: v5e:2x2
jax: 0.10.0
libtpu: 0.0.40
codegen_flags: <defaults>
</compile_context>

<pallas_src>
import functools

import jax
import jax.numpy as jnp
from jax.experimental import pallas as pl
from jax.experimental.pallas import tpu as pltpu

_MIB = 1024 * 1024


# --------------------------------------------------------------------------
# Wrapper-side helpers
# --------------------------------------------------------------------------
def _round_up(v, m):
    return (v + m - 1) // m * m


def _vmem_budget_bytes():
    """Usable VMEM budget, generation aware (v7x: 64 MiB, v5e/v6e: 128 MiB)."""
    try:
        cap = int(pltpu.get_tpu_info().vmem_capacity_bytes)
    except Exception:
        cap = 64 * _MIB                      # conservative (v7x-sized) fallback
    return max(32 * _MIB, cap - 10 * _MIB)   # leave headroom for the compiler


def _pick_l_tile(L, C, itemsize, per_block_target):
    """Lane-dense L tile: largest multiple of 128 <= L with C*tl*itemsize <= target."""
    if L <= 128:
        return L
    by_budget = (max(1, per_block_target // max(1, C * itemsize)) // 128) * 128
    tl = min((L // 128) * 128, by_budget)
    return max(128, tl)


# --------------------------------------------------------------------------
# Kernels
# --------------------------------------------------------------------------
def _eca1d_fused_kernel(w_ref, x_ref, o_ref, pad_ref, *, inv_l, C):
    """One batch per grid step: mean over L, 3-tap conv over C, sigmoid, gate.

    w_ref:   (3,) f32 conv taps in SMEM.
    x_ref:   (1, C, L) input tile (native dtype).
    o_ref:   (1, C, L) output tile.
    pad_ref: (1, C_pad) f32 VMEM scratch (C_pad = round_up(C, 128)) used as a
             zero-padded staging row so the channel shifts are full-lane rolls.
    """
    x = x_ref[...]
    # Per-channel mean over L with f32 accumulation (no f32 copy of the tile).
    y = jnp.sum(x, axis=-1, dtype=jnp.float32) * inv_l               # (1, C)

    # Stage the mean into a zero-padded row, then do the 3-tap channel conv
    # with two lane rolls + edge masks (no (C, C) banded matrix).
    pad_ref[...] = jnp.zeros_like(pad_ref)
    pad_ref[:, :C] = y
    yp = pad_ref[...]                                                # (1, C_pad)
    c_pad = yp.shape[-1]
    left = pltpu.roll(yp, shift=1, axis=1)                           # yp[c-1]
    right = pltpu.roll(yp, shift=c_pad - 1, axis=1)                  # yp[c+1]
    cidx = jax.lax.broadcasted_iota(jnp.int32, yp.shape, 1)
    left = jnp.where(cidx == 0, 0.0, left)                           # zero pad at c == 0
    right = jnp.where(cidx == C - 1, 0.0, right)                     # zero pad at c == C-1
    conv = w_ref[0] * left + w_ref[1] * yp + w_ref[2] * right
    pad_ref[...] = jax.nn.sigmoid(conv)
    gate = pad_ref[:, :C]                                            # (1, C) f32

    # Gating multiply in x's native dtype (one relayout of a tiny vector per batch).
    o_ref[...] = (x * gate[:, :, None].astype(x.dtype)).astype(o_ref.dtype)


def _eca1d_pool_kernel(x_ref, sum_ref, acc_ref, *, tl, valid_l):
    """grid = (B, n_lt): accumulate per-channel f32 sums over lane-dense L tiles."""
    lt = pl.program_id(1)

    @pl.when(lt == 0)
    def _init():
        acc_ref[...] = jnp.zeros_like(acc_ref)

    x = x_ref[...]
    if valid_l is not None:            # L % tl != 0: mask the out-of-bounds tail
        lidx = lt * tl + jax.lax.broadcasted_iota(jnp.int32, x.shape, 2)
        x = jnp.where(lidx < valid_l, x, jnp.zeros_like(x))
    acc_ref[...] += jnp.sum(x, axis=-1, dtype=jnp.float32)           # (1, C)

    @pl.when(lt == pl.num_programs(1) - 1)
    def _finalize():
        sum_ref[...] = acc_ref[...][None]                            # (1, 1, C)


def _eca1d_apply_kernel(gate_ref, x_ref, o_ref):
    """Pure lane-broadcast multiply: gate (1, C, 1) in x.dtype, x tile (1, C, tl)."""
    o_ref[...] = x_ref[...] * gate_ref[...]


# --------------------------------------------------------------------------
# Wrapper-side gate (tiny, plain JAX) for the two-pass path
# --------------------------------------------------------------------------
def _gate_from_sums(sums, w, inv_l, dtype):
    """(B, C) f32 channel sums -> (B, C, 1) gate in x's dtype."""
    y = sums * inv_l
    yp = jnp.pad(y, ((0, 0), (1, 1)))
    conv = w[0] * yp[:, :-2] + w[1] * yp[:, 1:-1] + w[2] * yp[:, 2:]
    return jax.nn.sigmoid(conv).astype(dtype)[:, :, None]


# --------------------------------------------------------------------------
# Public entry point
# --------------------------------------------------------------------------
def eca1d_layer(x, conv_weight, *, force_two_pass=False, l_tile=None):
    """x: (B, C, L); conv_weight: (1, 1, 3) as in nn.Conv1d(1, 1, 3, bias=False)."""
    B, C, L = x.shape
    w = conv_weight.reshape(3).astype(jnp.float32)
    inv_l = 1.0 / float(L)
    itemsize = jnp.dtype(x.dtype).itemsize
    block_bytes = C * L * itemsize

    budget = _vmem_budget_bytes()
    small_vmem_gen = budget < 96 * _MIB        # v7x-like part (64 MiB VMEM, 2 TCs)
    c_pad = _round_up(C, 128)

    # Fused path: in + out blocks double-buffered + tiny scratch.
    fused_need = 4 * block_bytes + 4 * c_pad + 2 * _MIB
    # On 2-TC parts a B == 1 fused grid pins all streaming to one core; the
    # fully-parallel two-pass apply keeps both cores busy for large L.
    prefer_two_pass_b1 = (small_vmem_gen and B == 1 and L >= 512
                          and block_bytes > 8 * _MIB)
    two_pass = force_two_pass or fused_need > budget or prefer_two_pass_b1

    if not two_pass:
        try:
            return pl.pallas_call(
                functools.partial(_eca1d_fused_kernel, inv_l=inv_l, C=C),
                out_shape=jax.ShapeDtypeStruct((B, C, L), x.dtype),
                grid=(B,),
                in_specs=[
                    pl.BlockSpec(memory_space=pltpu.MemorySpace.SMEM),   # conv taps
                    pl.BlockSpec((1, C, L), lambda b: (b, 0, 0)),        # x per batch
                ],
                out_specs=pl.BlockSpec((1, C, L), lambda b: (b, 0, 0)),
                scratch_shapes=[pltpu.VMEM((1, c_pad), jnp.float32)],
                compiler_params=pltpu.CompilerParams(
                    dimension_semantics=("parallel",),
                    vmem_limit_bytes=budget),
            )(w, x)
        except Exception:
            pass  # conservative fallback to the always-available two-pass path

    # ---- Two-pass path: pool (sums) -> wrapper conv+sigmoid -> tiled apply ----
    if l_tile is not None:
        tl_pool = tl_apply = min(int(l_tile), L)
    else:
        # Pool only double-buffers an input (2x); apply double-buffers in+out (4x).
        tl_pool = _pick_l_tile(L, C, itemsize, budget // 3)
        tl_apply = _pick_l_tile(L, C, itemsize, budget // 5)

    n_lt_pool = pl.cdiv(L, tl_pool)
    valid_pool = None if L % tl_pool == 0 else L
    sums = pl.pallas_call(
        functools.partial(_eca1d_pool_kernel, tl=tl_pool, valid_l=valid_pool),
        out_shape=jax.ShapeDtypeStruct((B, 1, C), jnp.float32),
        grid=(B, n_lt_pool),
        in_specs=[pl.BlockSpec((1, C, tl_pool), lambda b, lt: (b, 0, lt))],
        out_specs=pl.BlockSpec((1, 1, C), lambda b, lt: (b, 0, 0)),
        scratch_shapes=[pltpu.VMEM((1, C), jnp.float32)],
        compiler_params=pltpu.CompilerParams(
            dimension_semantics=("parallel", "arbitrary"),
            vmem_limit_bytes=budget),
    )(x)
    # TODO(synk): for B == 1 on 2-TC parts the pool reduction could also be
    # split over a leading parallel chunk axis with a tiny wrapper combine.

    gate = _gate_from_sums(sums[:, 0, :], w, inv_l, x.dtype)         # (B, C, 1)

    n_lt_apply = pl.cdiv(L, tl_apply)
    return pl.pallas_call(
        _eca1d_apply_kernel,
        out_shape=jax.ShapeDtypeStruct((B, C, L), x.dtype),
        grid=(B, n_lt_apply),
        in_specs=[
            pl.BlockSpec((1, C, 1), lambda b, lt: (b, 0, 0)),        # gate, resident
            pl.BlockSpec((1, C, tl_apply), lambda b, lt: (b, 0, lt)),
        ],
        out_specs=pl.BlockSpec((1, C, tl_apply), lambda b, lt: (b, 0, lt)),
        compiler_params=pltpu.CompilerParams(
            dimension_semantics=("parallel", "parallel"),
            vmem_limit_bytes=budget),
    )(gate, x)


# --------------------------------------------------------------------------
# Pure-JAX reference (PyTorch semantics)
# --------------------------------------------------------------------------
def eca1d_reference(x, conv_weight):
    w = conv_weight.reshape(3).astype(jnp.float32)
    y = jnp.mean(x.astype(jnp.float32), axis=-1)                     # (B, C)
    yp = jnp.pad(y, ((0, 0), (1, 1)))                                # zero pad over C
    conv = w[0] * yp[:, :-2] + w[1] * yp[:, 1:-1] + w[2] * yp[:, 2:]
    gate = jax.nn.sigmoid(conv)
    return (x * gate[:, :, None].astype(x.dtype)).astype(x.dtype)


if __name__ == "__main__":
    key = jax.random.PRNGKey(0)
    k_w, k1, k2, k3 = jax.random.split(key, 4)

    # Deterministic init for Conv1d(1, 1, 3, bias=False) weight, shape (1, 1, 3).
    bound = 1.0 / (1 * 3) ** 0.5
    conv_weight = jax.random.uniform(k_w, (1, 1, 3), dtype=jnp.float32,
                                     minval=-bound, maxval=bound)

    def check(x, **kw):
        out = jax.block_until_ready(eca1d_layer(x, conv_weight, **kw))
        ref = eca1d_reference(x, conv_weight)
        assert out.shape == x.shape and out.dtype == x.dtype
        assert jnp.allclose(out, ref, atol=1e-5, rtol=1e-5), "mismatch vs reference"

    # 1) Small shape -> fused single-pass kernel (roll-based channel conv).
    check(jax.random.normal(k1, (2, 8, 16), dtype=jnp.float32))

    # 2) Lane-dense shape, forced two-pass (pool -> wrapper conv -> tiled apply).
    check(jax.random.normal(k2, (1, 16, 1024), dtype=jnp.float32),
          force_two_pass=True, l_tile=256)

    # 3) L not a multiple of 128 -> masked last pool tile + partial apply block.
    check(jax.random.normal(k3, (2, 24, 300), dtype=jnp.float32),
          force_two_pass=True)

    print("KERNEL_OK")
</pallas_src>

<mosaic_0001>
module attributes {stable_mosaic.version = 11 : i64} {
  func.func @_eca1d_fused_kernel(%arg0: i32, %arg1: memref<3xf32, #tpu.memory_space<smem>>, %arg2: memref<1x8x16xf32, #tpu.memory_space<vmem>>, %arg3: memref<1x8x16xf32, #tpu.memory_space<vmem>>, %arg4: memref<1x128xf32, #tpu.memory_space<vmem>>) attributes {dimension_semantics = [#tpu.dimension_semantics<parallel>], iteration_bounds = array<i64: 2>, scalar_prefetch = 0 : i64, scratch_operands = 1 : i64, tpu.core_type = #tpu.core_type<tc>, window_params = [{transform_indices = @transform_0, window_bounds = array<i64: 3>}, {transform_indices = @transform_1, window_bounds = array<i64: 1, 8, 16>}, {transform_indices = @transform_2, window_bounds = array<i64: 1, 8, 16>}]} {
    %c0 = arith.constant 0 : index
    %c0_0 = arith.constant 0 : index
    %c0_1 = arith.constant 0 : index
    %0 = vector.load %arg2[%c0, %c0_0, %c0_1] : memref<1x8x16xf32, #tpu.memory_space<vmem>>, vector<1x8x16xf32>
    %cst = arith.constant dense<0.000000e+00> : vector<1x8xf32>
    %1 = vector.multi_reduction <add>, %0, %cst [2] : vector<1x8x16xf32> to vector<1x8xf32>
    %cst_2 = arith.constant 6.250000e-02 : f32
    %2 = vector.broadcast %cst_2 : f32 to vector<1x8xf32>
    %3 = arith.mulf %1, %2 : vector<1x8xf32>
    %cst_3 = arith.constant 0.000000e+00 : f32
    %4 = vector.broadcast %cst_3 : f32 to vector<1x128xf32>
    %c0_4 = arith.constant 0 : index
    %c0_5 = arith.constant 0 : index
    %5 = vector.load %arg4[%c0_4, %c0_5] : memref<1x128xf32, #tpu.memory_space<vmem>>, vector<1x128xf32>
    tpu.vector_store %arg4[%c0_4, %c0_5], %4 {strides = array<i32>} : memref<1x128xf32, #tpu.memory_space<vmem>>, vector<1x128xf32>,
    %c0_6 = arith.constant 0 : index
    %c0_7 = arith.constant 0 : index
    %6 = vector.load %arg4[%c0_6, %c0_7] : memref<1x128xf32, #tpu.memory_space<vmem>>, vector<1x8xf32>
    tpu.vector_store %arg4[%c0_6, %c0_7], %3 {strides = array<i32>} : memref<1x128xf32, #tpu.memory_space<vmem>>, vector<1x8xf32>,
    %c0_8 = arith.constant 0 : index
    %c0_9 = arith.constant 0 : index
    %7 = vector.load %arg4[%c0_8, %c0_9] : memref<1x128xf32, #tpu.memory_space<vmem>>, vector<1x128xf32>
    %c1_i32 = arith.constant 1 : i32
    %8 = tpu.dynamic_rotate %7 by %c1_i32 dim 1 : vector<1x128xf32>, i32 -> vector<1x128xf32>
    %c127_i32 = arith.constant 127 : i32
    %9 = tpu.dynamic_rotate %7 by %c127_i32 dim 1 : vector<1x128xf32>, i32 -> vector<1x128xf32>
    %10 = tpu.iota {dimensions = array<i32: 1>} : vector<1x128xi32>
    %c0_i32 = arith.constant 0 : i32
    %11 = vector.broadcast %c0_i32 : i32 to vector<1x128xi32>
    %12 = arith.cmpi eq, %10, %11 : vector<1x128xi32>
    %cst_10 = arith.constant 0.000000e+00 : f32
    %13 = vector.broadcast %cst_10 : f32 to vector<1x128xf32>
    %14 = arith.select %12, %13, %8 : vector<1x128xi1>, vector<1x128xf32>
    %c7_i32 = arith.constant 7 : i32
    %15 = vector.broadcast %c7_i32 : i32 to vector<1x128xi32>
    %16 = arith.cmpi eq, %10, %15 : vector<1x128xi32>
    %cst_11 = arith.constant 0.000000e+00 : f32
    %17 = vector.broadcast %cst_11 : f32 to vector<1x128xf32>
    %18 = arith.select %16, %17, %9 : vector<1x128xi1>, vector<1x128xf32>
    %c0_12 = arith.constant 0 : index
    %19 = memref.load %arg1[%c0_12] : memref<3xf32, #tpu.memory_space<smem>>
    %20 = vector.broadcast %19 : f32 to vector<1x128xf32>
    %21 = arith.mulf %20, %14 : vector<1x128xf32>
    %c1 = arith.constant 1 : index
    %22 = memref.load %arg1[%c1] : memref<3xf32, #tpu.memory_space<smem>>
    %23 = vector.broadcast %22 : f32 to vector<1x128xf32>
    %24 = arith.mulf %23, %7 : vector<1x128xf32>
    %25 = arith.addf %21, %24 : vector<1x128xf32>
    %c2 = arith.constant 2 : index
    %26 = memref.load %arg1[%c2] : memref<3xf32, #tpu.memory_space<smem>>
    %27 = vector.broadcast %26 : f32 to vector<1x128xf32>
    %28 = arith.mulf %27, %18 : vector<1x128xf32>
    %29 = arith.addf %25, %28 : vector<1x128xf32>
    %30 = arith.negf %29 : vector<1x128xf32>
    %31 = math.exp %30 : vector<1x128xf32>
    %cst_13 = arith.constant 1.000000e+00 : f32
    %32 = vector.broadcast %cst_13 : f32 to vector<1x128xf32>
    %33 = arith.addf %32, %31 : vector<1x128xf32>
    %34 = arith.divf %32, %33 : vector<1x128xf32>
    %c0_14 = arith.constant 0 : index
    %c0_15 = arith.constant 0 : index
    %35 = vector.load %arg4[%c0_14, %c0_15] : memref<1x128xf32, #tpu.memory_space<vmem>>, vector<1x128xf32>
    tpu.vector_store %arg4[%c0_14, %c0_15], %34 {strides = array<i32>} : memref<1x128xf32, #tpu.memory_space<vmem>>, vector<1x128xf32>,
    %c0_16 = arith.constant 0 : index
    %c0_17 = arith.constant 0 : index
    %36 = vector.load %arg4[%c0_16, %c0_17] : memref<1x128xf32, #tpu.memory_space<vmem>>, vector<1x8xf32>
    %37 = vector.shape_cast %36 : vector<1x8xf32> to vector<1x8x1xf32>
    %38 = vector.broadcast %37 : vector<1x8x1xf32> to vector<1x8x16xf32>
    %39 = arith.mulf %0, %38 : vector<1x8x16xf32>
    %c0_18 = arith.constant 0 : index
    %c0_19 = arith.constant 0 : index
    %c0_20 = arith.constant 0 : index
    %40 = vector.load %arg3[%c0_18, %c0_19, %c0_20] : memref<1x8x16xf32, #tpu.memory_space<vmem>>, vector<1x8x16xf32>
    tpu.vector_store %arg3[%c0_18, %c0_19, %c0_20], %39 {strides = array<i32>} : memref<1x8x16xf32, #tpu.memory_space<vmem>>, vector<1x8x16xf32>,
    return
  }
  func.func @transform_0(%arg0: i32) -> i32 {
    %c0_i32 = arith.constant 0 : i32
    %c0_i32_0 = arith.constant 0 : i32
    return %c0_i32 : i32
  }
  func.func @transform_1(%arg0: i32) -> (i32, i32, i32) {
    %c0_i32 = arith.constant 0 : i32
    %c0_i32_0 = arith.constant 0 : i32
    %c0_i32_1 = arith.constant 0 : i32
    return %arg0, %c0_i32, %c0_i32_0 : i32, i32, i32
  }
  func.func @transform_2(%arg0: i32) -> (i32, i32, i32) {
    %c0_i32 = arith.constant 0 : i32
    %c0_i32_0 = arith.constant 0 : i32
    %c0_i32_1 = arith.constant 0 : i32
    return %arg0, %c0_i32, %c0_i32_0 : i32, i32, i32
  }
}

module attributes {stable_mosaic.version = 11 : i64} {
  func.func @_eca1d_pool_kernel(%arg0: i32, %arg1: i32, %arg2: memref<1x8x16xf32, #tpu.memory_space<vmem>>, %arg3: memref<1x1x8xf32, #tpu.memory_space<vmem>>, %arg4: memref<1x8xf32, #tpu.memory_space<vmem>>) attributes {dimension_semantics = [#tpu.dimension_semantics<parallel>, #tpu.dimension_semantics<arbitrary>], iteration_bounds = array<i64: 2, 1>, scalar_prefetch = 0 : i64, scratch_operands = 1 : i64, tpu.core_type = #tpu.core_type<tc>, window_params = [{transform_indices = @transform_0, window_bounds = array<i64: 1, 8, 16>}, {transform_indices = @transform_1, window_bounds = array<i64: 1, 1, 8>}]} {
    %c0_i32 = arith.constant 0 : i32
    %0 = arith.cmpi eq, %arg1, %c0_i32 : i32
    %1 = arith.extui %0 : i1 to i32
    %c0_i32_0 = arith.constant 0 : i32
    %2 = arith.cmpi ne, %1, %c0_i32_0 : i32
    scf.if %2 {
      %cst_9 = arith.constant 0.000000e+00 : f32
      %11 = vector.broadcast %cst_9 : f32 to vector<1x8xf32>
      %c0_10 = arith.constant 0 : index
      %c0_11 = arith.constant 0 : index
      %12 = vector.load %arg4[%c0_10, %c0_11] : memref<1x8xf32, #tpu.memory_space<vmem>>, vector<1x8xf32>
      tpu.vector_store %arg4[%c0_10, %c0_11], %11 {strides = array<i32>} : memref<1x8xf32, #tpu.memory_space<vmem>>, vector<1x8xf32>,
    } else {
    }
    %c0 = arith.constant 0 : index
    %c0_1 = arith.constant 0 : index
    %c0_2 = arith.constant 0 : index
    %3 = vector.load %arg2[%c0, %c0_1, %c0_2] : memref<1x8x16xf32, #tpu.memory_space<vmem>>, vector<1x8x16xf32>
    %c0_3 = arith.constant 0 : index
    %c0_4 = arith.constant 0 : index
    %4 = vector.load %arg4[%c0_3, %c0_4] : memref<1x8xf32, #tpu.memory_space<vmem>>, vector<1x8xf32>
    %cst = arith.constant dense<0.000000e+00> : vector<1x8xf32>
    %5 = vector.multi_reduction <add>, %3, %cst [2] : vector<1x8x16xf32> to vector<1x8xf32>
    %6 = arith.addf %4, %5 : vector<1x8xf32>
    %c0_5 = arith.constant 0 : index
    %c0_6 = arith.constant 0 : index
    %7 = vector.load %arg4[%c0_5, %c0_6] : memref<1x8xf32, #tpu.memory_space<vmem>>, vector<1x8xf32>
    tpu.vector_store %arg4[%c0_5, %c0_6], %6 {strides = array<i32>} : memref<1x8xf32, #tpu.memory_space<vmem>>, vector<1x8xf32>,
    %c0_i32_7 = arith.constant 0 : i32
    %8 = arith.cmpi eq, %arg1, %c0_i32_7 : i32
    %9 = arith.extui %8 : i1 to i32
    %c0_i32_8 = arith.constant 0 : i32
    %10 = arith.cmpi ne, %9, %c0_i32_8 : i32
    scf.if %10 {
      %c0_9 = arith.constant 0 : index
      %c0_10 = arith.constant 0 : index
      %11 = vector.load %arg4[%c0_9, %c0_10] : memref<1x8xf32, #tpu.memory_space<vmem>>, vector<1x8xf32>
      %12 = vector.shape_cast %11 : vector<1x8xf32> to vector<1x1x8xf32>
      %c0_11 = arith.constant 0 : index
      %c0_12 = arith.constant 0 : index
      %c0_13 = arith.constant 0 : index
      %13 = vector.load %arg3[%c0_11, %c0_12, %c0_13] : memref<1x1x8xf32, #tpu.memory_space<vmem>>, vector<1x1x8xf32>
      tpu.vector_store %arg3[%c0_11, %c0_12, %c0_13], %12 {strides = array<i32>} : memref<1x1x8xf32, #tpu.memory_space<vmem>>, vector<1x1x8xf32>,
    } else {
    }
    return
  }
  func.func @transform_0(%arg0: i32, %arg1: i32) -> (i32, i32, i32) {
    %c0_i32 = arith.constant 0 : i32
    %c0_i32_0 = arith.constant 0 : i32
    return %arg0, %c0_i32, %arg1 : i32, i32, i32
  }
  func.func @transform_1(%arg0: i32, %arg1: i32) -> (i32, i32, i32) {
    %c0_i32 = arith.constant 0 : i32
    %c0_i32_0 = arith.constant 0 : i32
    %c0_i32_1 = arith.constant 0 : i32
    return %arg0, %c0_i32, %c0_i32_0 : i32, i32, i32
  }
}

</mosaic_0001>

<bundles_post_ra>
// kernel: tpu_custom_call.1
= control target key start
LH: loop header
LB: loop body
LE: loop exit
PB: predicated region body
PF: predicated region fallthrough
CT: control target
= control target key end

     0   :  { %7 = vsyncpa [#allocation6], 0  ;;  %s705_s0 = inlined_call_operand.hbm [shape: f32[3], index: 0, kind: input, shape index: {}]   ;;  %s706_s1 = inlined_call_operand.hbm [shape: f32[2,8,16], index: 1, kind: input, shape index: {}]   ;;  %s707_s2 = inlined_call_operand.hbm [shape: f32[2,8,16], index: 2, kind: output, shape index: {}]  }
   0x1   :  { %8 = vsyncpa [#allocation4], 0 }
   0x2   :  { %10 = vsyncpa [#allocation4 + $0x1], 0 }
   0x3   :  { %11 = vsyncpa [#allocation5], 0 }
   0x4   :  { %13 = vsyncpa [#allocation5 + $0x1], 0  ;;  %s557_s9 = smov 0   ;;  %s559_s10 = smov 0  }
   0x5   :  { %s561_s11 = smov 0   ;;  %s563_s12 = smov 0  }
   0x6 LB: > { %s578_s13 = sadd.s32 4294967295, %s536_s12   ;;  %s337_s14 = sadd.s32 4294967294, %s536_s12   ;;  %s536_s12 = sphi %s563_s12, %s717_s12   ;;  %s532_s11 = sphi %s561_s11, %s716_s11   ;;  %s528_s10 = sphi %s559_s10, %s715_s10   ;;  %s524_s9 = sphi %s557_s9, %s714_s9  }
   0x7   : > { %p60_p0 = scmp.ne.s32.totalorder %s528_s10, %s524_s9  ;;  %p61_p1 = scmp.eq.s32.totalorder %s578_s13, 0 }
   0x8   : > { %p84_p2 = scmp.eq.s32.totalorder %s578_s13, 1  ;;  %p90_p3 = scmp.eq.s32.totalorder %s337_s14, 1 }
   0x9   : > { %p587_p4 = por %p61_p1, %p60_p0  ;;  %p338_p5 = scmp.ge.s32.totalorder %s536_s12, 1 }
   0xa   : > { %p592_p6 = por %p90_p3, %p60_p0  ;;  %p97_p7 = scmp.lt.s32.totalorder %s536_s12, 3 }
   0xb   : > { %s109_s19 = sshll.u32 %s705_s0, 4  ;;  %s608_s21 = sadd.s32 1, %s536_s12   ;;  %s110_s19 = int_to_ptr.hbm [resolvable:$true] %s109_s19 }
   0xc   : > { %p600_p8 = pnand %p338_p5, %p97_p7  ;;  %s44_s22 = ssub.s32 %s536_s12, %s608_s21 }
   0xd   : > { %p45_p12 = scmp.eq.s32.totalorder %s44_s22, 0  ;;  %s47_s23 = sadd.s32 1, %s532_s11 }
   0xe   : > { %p362_p10 = pneg %p600_p8  ;;  %p54_p13 = scmp.ne.s32.totalorder %s532_s11, %s528_s10 }
   0xf   : > { %s538_s24 = smov [#allocation3]   ;;  %p55_p0 = scmp.eq.s32.totalorder %s536_s12, 0 }
  0x10   : > { %p363_p11 = pnand %p362_p10, %p61_p1  ;;  %p623_p3 = por %p84_p2, %p54_p13 }
  0x11   : > { %s618_s25 = scalar_select %p45_p12, %s532_s11, %s47_s23  }
  0x12   : > { %365 = dma.hbm_to_smem (!%p363_p11), %s110_s19, 16, %s538_s24, [#allocation6]  }
  0x13   : > { %s120_s27 = sand.u32 1, %s532_s11   ;;  %p56_p5 = por %p55_p0, %p54_p13 }
  0x14   : > { %p375_p7 = scmp.lt.s32.totalorder %s536_s12, 2  ;;  %s341_s28 = sshll.u32 %s120_s27, 3 }
  0x15   : > { %s342_s29 = sshll.u32 %s536_s12, 3  ;;  %s124_s6 = scalar_lea.vmem [#allocation7], %s341_s28 }
  0x16   : > { %s128_s4 = scalar_lea.hbm %s706_s1, %s342_s29  ;;  %s132_s7 = sshll.u32 %s124_s6, 4  ;;  %s133_s7 = int_to_ptr.vmem [resolvable:$true] %s132_s7 }
  0x17   : > { %s130_s5 = sshll.u32 %s128_s4, 4  ;;  %p633_p10 = pnand %p375_p7, %p56_p5  ;;  %s131_s5 = int_to_ptr.hbm [resolvable:$true] %s130_s5 }
  0x18   : > { %s121_s14 = scalar_lea.sflag [#allocation4], %s120_s27  ;;  %s436_s17 = sshra.s32 %s131_s5, 4  ;;  %s437_s17 = int_to_ptr.hbm [resolvable:$true] %s436_s17 }
  0x19   : > { %s438_s18 = scalar_lea.hbm %s437_s17, 8  ;;  %p440_p11 = pneg %p633_p10 }
  0x1a   : > { %p439_p2 = scmp.ne.s32.totalorder %s437_s17, %s438_s18  ;;  %s443_s23 = scalar_lea.hbm %s706_s1, 16 }
  0x1b   : > { %p444_p0 = scmp.lt.s32.totalorder %s437_s17, %s706_s1  ;;  %p445_p5 = scmp.lt.s32.totalorder %s443_s23, %s438_s18 }
  0x1c   : > { %p441_p12 = pnand %p440_p11, %p439_p2 }
  0x1d   : > { %p446_p7 = por %p445_p5, %p444_p0 }
  0x1e   : > { %p442_p13 = pneg %p441_p12 }
  0x20   : > { %p447_p9 = pnand %p446_p7, %p442_p13 }
  0x22   : > { %450 = shalt.err (!%p447_p9)
}
  0x23   : > { %369 = dma.hbm_to_vmem [thread:$0]  (!%p633_p10), %s131_s5, 128, %s133_s7, %s121_s14  }
  0x24   : > { %141 = sbr.rel (%p600_p8) target bundleno = 456 (0x1c8), region = 28 }
  0x29   : > { %511 = dma.done.wait (%p61_p1), [#allocation6], 16  }
  0x2a   : > { %513 = vsyncadd (%p61_p1), [#allocation6], 4294967280  ;;  %s654_s27 = sand.u32 1, %s528_s10  }
  0x2b   : > { %s345_s29 = sshll.u32 %s654_s27, 3  ;;  %s149_s30 = scalar_lea.sflag [#allocation4], %s654_s27 }
  0x2c   : > { %s152_s3 = scalar_lea.vmem [#allocation7], %s345_s29 }
  0x2d   : > { %515 = dma.done.wait (%p587_p4), %s149_s30, 128  }
  0x2e   : > { %517 = vsyncadd (%p587_p4), %s149_s30, 4294967168 }
  0x2f   : > { %158 = sfence }
  0x30   : > { %v664_v0 = vld [vmem:[%s152_s3] sm:$0xff]  ;;  %vm176_vm0 = vcmask 130048   ;;  %v539_v2 = vmov 0.0   ;;  %v183_v3 = vlaneseq  ;;  %vm187_vm1 = vcmask 57344   ;;  %s540_s15 = smov 127   ;;  %s541_s20 = smov 1  }
  0x31   : > { %v177_v1 = vsel %vm176_vm0, %v664_v0, 0.0  ;;  %181 = vst [vmem:[#allocation2] sm:$0x1] %v539_v2  ;;  %s347_s4 = sld [smem:[#allocation3 + $0x1]]  ;;  %s351_s7 = sshll.u32 %s578_s13, 3 }
  0x32   : > { %178 = vadd.xlane.f32.xlu0 %v177_v1  ;;  %v184_v4 = vand.u32 127, %v183_v3  ;;  %s198_s5 = sld [smem:[#allocation3]]  ;;  %v232_v18 = vshrl.u32 %v183_v3, 7  ;;  %s250_s17 = scalar_lea.hbm %s707_s2, %s351_s7 }
  0x33   : > { %s348_s6 = sld [smem:[#allocation3 + $0x2]]  ;;  %s174_s18 = scalar_lea.vmem [#allocation8], %s345_s29 }
  0x34   : > { %vm196_vm2 = vcmp.eq.s32.totalorder %v184_v4, 7  ;;  %vm194_vm3 = vcmp.eq.s32.totalorder %v184_v4, 0  ;;  %414 = vset.pattern.permute.xlu1 %v232_v18  ;;  %415 = vset.pattern.permute.xlu0 %v232_v18  ;;  %s252_s19 = sshll.u32 %s174_s18, 4  ;;  %s254_s22 = sshll.u32 %s250_s17, 4  ;;  %s253_s19 = int_to_ptr.vmem [resolvable:$true] %s252_s19  ;;  %s255_s22 = int_to_ptr.hbm [resolvable:$true] %s254_s22 }
  0x35   : > { %s240_s23 = scalar_lea.sflag [#allocation5], %s654_s27  ;;  %s480_s24 = sshra.s32 %s255_s22, 4  ;;  %s481_s24 = int_to_ptr.hbm [resolvable:$true] %s480_s24 }
  0x36   : > { %s482_s28 = scalar_lea.hbm %s481_s24, 8  ;;  %s486_s29 = scalar_lea.hbm %s707_s2, 16 }
  0x37   : > { %v202_v10 = vstv %s347_s4  ;;  %p483_p1 = scmp.ne.s32.totalorder %s481_s24, %s482_s28  ;;  %p487_p9 = scmp.lt.s32.totalorder %s481_s24, %s707_s2 }
  0x38   : > { %v199_v9 = vstv %s198_s5  ;;  %p488_p10 = scmp.lt.s32.totalorder %s486_s29, %s482_s28 }
  0x39   : > { %v206_v13 = vstv %s348_s6  ;;  %p484_p4 = pnand %p483_p1, %p623_p3 }
  0x3a   : > { %p489_p2 = por %p488_p10, %p487_p9 }
  0x3b   : > { %p485_p8 = pneg %p484_p4 }
  0x3d   : > { %p490_p11 = pnand %p489_p2, %p485_p8 }
  0xa5   : > { %v179_v5 = vpop.xlane.xlu0 %178 }
  0xa6   : > { %v180_v6 = vmul.f32 0.0625, %v179_v5 }
  0xa8   : > { %v185_v7 = vperm.slane %v180_v6, %v184_v4 }
  0xaa   : > { %188 = vst.msk [vmem:[#allocation2] sm:$0x1] %vm187_vm1, %v185_v7 }
  0xb1   : > { %v189_v8 = vld [vmem:[#allocation2] sm:$0x1] }
  0xb2   : > { %192 = vrot.lane.b32.xlu1 %v189_v8, %s540_s15  ;;  %190 = vrot.lane.b32.xlu0 %v189_v8, %s541_s20  ;;  %v203_v17 = vmul.f32 %v202_v10, %v189_v8 }
 0x124   : > { %v193_v11 = vpop.permute.xlu1 %192  ;;  %v191_v12 = vpop.permute.xlu0 %190 }
 0x125   : > { %v197_v14 = vsel %vm196_vm2, 0.0, %v193_v11  ;;  %v195_v15 = vsel %vm194_vm3, 0.0, %v191_v12 }
 0x126   : > { %v200_v16 = vmul.f32 %v199_v9, %v195_v15  ;;  %v207_v19 = vmul.f32 %v206_v13, %v197_v14 }
 0x128   : > { %v204_v20 = vadd.f32 %v203_v17, %v200_v16 }
 0x12a   : > { %v208_v21 = vadd.f32 %v207_v19, %v204_v20 }
 0x12c   : > { %v349_v22 = vmul.f32 -1.442695, %v208_v21 }
 0x12e   : > { %417 = vpow2.f32 %v349_v22 }
 0x134   : > { %v418_v23 = vpop.eup %417 }
 0x135   : > { %v212_v24 = vadd.f32 1.0, %v418_v23 }
 0x137   : > { %419 = vrcp.f32 %v212_v24  ;;  %v224_v28 = vand.u32 2147483648, %v212_v24  ;;  %v222_v30 = vand.u32 2147483647, %v212_v24  ;;  %vm218_vm5 = vweird.f32 %v212_v24 }
 0x139   : > { %v225_v32 = vor.u32 1.1754944e-38, %v224_v28  ;;  %vm223_vm7 = vcmp.eq.f32.partialorder %v222_v30, 8.507059e+37 }
 0x13d   : > { %v420_v25 = vpop.eup %419 }
 0x13e   : > { %v214_v26 = vmul.f32 %v420_v25, %v212_v24  ;;  %vm219_vm4 = vweird.f32 %v420_v25 }
 0x13f   : > { %vm220_vm6 = vmor %vm218_vm5, %vm219_vm4 }
 0x140   : > { %v215_v27 = vsub.f32 1.0, %v214_v26 }
 0x142   : > { %v216_v29 = vmul.f32 %v420_v25, %v215_v27 }
 0x144   : > { %v217_v31 = vadd.f32 %v420_v25, %v216_v29 }
 0x146   : > { %v221_v33 = vsel %vm220_vm6, %v420_v25, %v217_v31 }
 0x147   : > { %v226_v34 = vsel %vm223_vm7, %v225_v32, %v221_v33 }
 0x148   : > { %228 = vst [vmem:[#allocation2] sm:$0x1] %v226_v34 }
 0x14f   : > { %v416_v35 = vld [vmem:[#allocation2] ss:$0 sm:$0xff] }
 0x150   : > { %235 = vperm.xlu1 %414, %v416_v35  }
 0x1c2   : > { %v236_v36 = vpop.permute.xlu1 %235 }
 0x1c3   : > { %v237_v37 = vmul.f32 %v236_v36, %v664_v0 }
 0x1c5   : > { %238 = vst.msk [vmem:[%s174_s18] sm:$0xff] %vm176_vm0, %v237_v37 }
 0x1c6   : > { %493 = shalt.err (!%p490_p11)
}
 0x1c7   : > { %360 = dma.vmem_to_hbm [thread:$0]  (%p623_p3), %s253_s19, 128, %s255_s22, %s240_s23  }
 0x1c8 PF: > { %s266_s27 = sand.u32 1, %s524_s9   ;;  %p713_p12 = scmp.ge.s32.totalorder %s536_s12, 2 }
 0x1c9   : > { %s267_s20 = scalar_lea.sflag [#allocation5], %s266_s27 }
 0x1ca   : > { %p371_p13 = pnand %p713_p12, %p592_p6 }
 0x1cc   : > { %p372_p0 = pneg %p371_p13 }
 0x1ce   : > { %519 = dma.done.wait (%p372_p0), %s267_s20, 128  }
 0x1cf   : > { %521 = vsyncadd (%p372_p0), %s267_s20, 4294967168  ;;  %p16_p5 = scmp.ge.s32.totalorder %s608_s21, 4   ;;  %s714_s9 = smov %s528_s10 }
 0x1d0   : > { %s715_s10 = smov %s532_s11  ;;  %s716_s11 = smov %s618_s25 }
 0x1d1   : > { %s717_s12 = smov %s608_s21  ;;  %18 = sbr.rel (!%p16_p5) target bundleno = 6 (0x6), region = 78 }
 0x1d6   :  { %273 = vsyncpa [#allocation4], 1 }
 0x1d7   :  { %275 = vsyncpa [#allocation4 + $0x1], 1 }
 0x1d8   :  { %276 = vsyncpa [#allocation5], 1 }
 0x1d9   :  { %278 = vsyncpa [#allocation5 + $0x1], 1 }
 0x1da   :  { %279 = vsyncpa [#allocation6], 1 }
 0x1db   :  { %281 = vsyncpa [#allocation6 + $0x1], 1 }

// kernel: tpu_custom_call.1
= control target key start
LH: loop header
LB: loop body
LE: loop exit
PB: predicated region body
PF: predicated region fallthrough
CT: control target
= control target key end

     0   :  { %6 = vsyncpa [#allocation4], 0  ;;  %s613_s0 = inlined_call_operand.hbm [shape: f32[2,8,16], index: 0, kind: input, shape index: {}]   ;;  %s614_s1 = inlined_call_operand.hbm [shape: f32[2,1,8], index: 1, kind: output, shape index: {}]  }
   0x1   :  { %8 = vsyncpa [#allocation4 + $0x1], 0 }
   0x2   :  { %9 = vsyncpa [#allocation5], 0 }
   0x3   :  { %11 = vsyncpa [#allocation5 + $0x1], 0  ;;  %s489_s6 = smov 0   ;;  %s491_s7 = smov 0  }
   0x4   :  { %s493_s8 = smov 0   ;;  %s495_s9 = smov 0  }
   0x5   :  { %s497_s10 = smov 0   ;;  %s499_s11 = smov 0  }
   0x6 LB: > { %s288_s12 = sadd.s32 4294967295, %s475_s11   ;;  %s289_s13 = sadd.s32 4294967294, %s475_s11   ;;  %s475_s11 = sphi %s499_s11, %s17_s11   ;;  %s471_s10 = sphi %s497_s10, %s623_s10   ;;  %s467_s9 = sphi %s495_s9, %s622_s9   ;;  %s463_s8 = sphi %s493_s8, %s621_s8   ;;  %s459_s7 = sphi %s491_s7, %s620_s7   ;;  %s455_s6 = sphi %s489_s6, %s619_s6  }
   0x7   : > { %s29_s14 = sadd.s32 1, %s471_s10  ;;  %s38_s15 = sadd.s32 1, %s463_s8 }
   0x8   : > { %p31_p0 = scmp.ge.s32.totalorder %s29_s14, 2  ;;  %p45_p1 = scmp.ne.s32.totalorder %s463_s8, %s459_s7 }
   0x9   : > { %p46_p2 = scmp.eq.s32.totalorder %s475_s11, 0  ;;  %p51_p3 = scmp.ne.s32.totalorder %s459_s7, %s455_s6 }
   0xa   : > { %s625_s14 = smov (%p31_p0, %s29_s14), 0  ;;  %p52_p5 = scmp.eq.s32.totalorder %s288_s12, 0 }
   0xb   : > { %p530_p4 = por %p46_p2, %p45_p1  ;;  %s33_s17 = ssub.s32 %s471_s10, %s625_s14 }
   0xc   : > { %p75_p6 = scmp.eq.s32.totalorder %s288_s12, 1  ;;  %p36_p7 = scmp.eq.s32.totalorder %s33_s17, 0 }
   0xd   : > { %p536_p8 = por %p52_p5, %p51_p3  ;;  %p81_p10 = scmp.eq.s32.totalorder %s289_s13, 1 }
   0xe   : > { %p540_p9 = por %p75_p6, %p45_p1  ;;  %p291_p12 = scmp.ge.s32.totalorder %s475_s11, 2 }
   0xf   : > { %s545_s20 = scalar_select %p36_p7, %s463_s8, %s38_s15  }
  0x10   : > { %p547_p11 = por %p81_p10, %p51_p3  ;;  %p310_p13 = scmp.lt.s32.totalorder %s475_s11, 2 }
  0x11   : > { %s101_s22 = sand.u32 1, %s463_s8   ;;  %s293_s24 = sshll.u32 %s471_s10, 3 }
  0x12   : > { %s292_s23 = sshll.u32 %s101_s22, 3  ;;  %s110_s27 = scalar_lea.hbm %s613_s0, %s293_s24 }
  0x13   : > { %s105_s28 = scalar_lea.vmem [#allocation3], %s292_s23  ;;  %s112_s30 = sshll.u32 %s110_s27, 4  ;;  %s113_s30 = int_to_ptr.hbm [resolvable:$true] %s112_s30 }
  0x14   : > { %s114_s29 = sshll.u32 %s105_s28, 4  ;;  %p303_p0 = pnand %p310_p13, %p530_p4  ;;  %s115_s29 = int_to_ptr.vmem [resolvable:$true] %s114_s29 }
  0x15   : > { %p294_p1 = scmp.ge.s32.totalorder %s475_s11, 1  ;;  %p119_p2 = scmp.lt.s32.totalorder %s475_s11, 3 }
  0x16   : > { %s102_s2 = scalar_lea.sflag [#allocation4], %s101_s22 }
  0x17   : > { %305 = dma.hbm_to_vmem [thread:$0]  (!%p303_p0), %s113_s30, 128, %s115_s29, %s102_s2  }
  0x18   : > { %p120_p3 = pnand %p294_p1, %p119_p2 }
  0x19   : > { %s563_s3 = sand.u32 (!%p120_p3), 1, %s459_s7  }
  0x1a   : > { %123 = sbr.rel (%p120_p3) target bundleno = 297 (0x129), region = 24  ;;  %s295_s4 = sshll.u32 (!%p120_p3), %s563_s3, 3 }
  0x1b   : > { %s126_s5 = scalar_lea.sflag (!%p120_p3), [#allocation4], %s563_s3  ;;  %s129_s12 = scalar_lea.vmem (!%p120_p3), [#allocation3], %s295_s4 }
  0x1f   : > { %446 = dma.done.wait (%p536_p8), %s126_s5, 128  }
  0x20   : > { %448 = vsyncadd (%p536_p8), %s126_s5, 4294967168  ;;  %vm156_vm0 = vcmask 130048   ;;  %v154_v0 = vld [vmem:[%s129_s12] sm:$0xff]  ;;  %v477_v2 = vmov 0   ;;  %vm152_vm1 = vcmask 57344   ;;  %v478_v3 = vmov 0.0   ;;  %s209_s16 = scalar_lea.hbm %s614_s1, %s467_s9 }
  0x21   : > { %v157_v1 = vsel %vm156_vm0, %v154_v0, 0.0  ;;  %362 = vset.pattern.permute.xlu0 %v477_v2  ;;  %153 = vst.msk [vmem:[#allocation2] sm:$0x1] %vm152_vm1, %v478_v3  ;;  %v188_v14 = vlaneseq  ;;  %s147_s17 = scalar_lea.vmem [#allocation6], %s563_s3  ;;  %s213_s22 = sshll.u32 %s209_s16, 4  ;;  %s214_s22 = int_to_ptr.hbm [resolvable:$true] %s213_s22 }
  0x22   : > { %158 = vadd.xlane.f32.xlu0 %v157_v1  ;;  %s211_s18 = sshll.u32 %s147_s17, 4  ;;  %s201_s23 = scalar_lea.sflag [#allocation5], %s563_s3  ;;  %s212_s18 = int_to_ptr.vmem [resolvable:$true] %s211_s18 }
  0x23   : > { %v189_v15 = vand.u32 127, %v188_v14  ;;  %s407_s24 = sshra.s32 %s214_s22, 4  ;;  %s413_s9 = scalar_lea.hbm %s614_s1, 2  ;;  %s408_s24 = int_to_ptr.hbm [resolvable:$true] %s407_s24 }
  0x24   : > { %s409_s25 = scalar_lea.hbm %s408_s24, 1  ;;  %p414_p7 = scmp.lt.s32.totalorder %s408_s24, %s614_s1 }
  0x25   : > { %p410_p4 = scmp.ne.s32.totalorder %s408_s24, %s409_s25  ;;  %p415_p8 = scmp.lt.s32.totalorder %s413_s9, %s409_s25 }
  0x27   : > { %p411_p5 = pnand %p410_p4, %p540_p9  ;;  %p416_p10 = por %p415_p8, %p414_p7 }
  0x28   : > { %v155_v17 = vld [vmem:[#allocation2] sm:$0x1] }
  0x29   : > { %p412_p6 = pneg %p411_p5 }
  0x2b   : > { %p417_p13 = pnand %p416_p10, %p412_p6 }
  0x95   : > { %v159_v4 = vpop.xlane.xlu0 %158 }
  0x96   : > { %v161_v5 = vperm.slane %v159_v4, 0  ;;  %v162_v6 = vperm.slane %v159_v4, 1  ;;  %v163_v7 = vperm.slane %v159_v4, 2  ;;  %v164_v8 = vperm.slane %v159_v4, 3 }
  0x97   : > { %v165_v9 = vperm.slane %v159_v4, 4  ;;  %v166_v10 = vperm.slane %v159_v4, 5  ;;  %v167_v11 = vperm.slane %v159_v4, 6  ;;  %v168_v12 = vperm.slane %v159_v4, 7 }
  0x98   : > { %169 = vst [vmem:[#allocation1] ss:$9 sm:$0xff] %v161_v5 }
  0x99   : > { %171 = vst [vmem:[#allocation1 + $0x1] ss:$9 sm:$0xff] %v162_v6 }
  0x9a   : > { %173 = vst [vmem:[#allocation1 + $0x2] ss:$9 sm:$0xff] %v163_v7 }
  0x9b   : > { %175 = vst [vmem:[#allocation1 + $0x3] ss:$9 sm:$0xff] %v164_v8 }
  0x9c   : > { %177 = vst [vmem:[#allocation1 + $0x4] ss:$9 sm:$0xff] %v165_v9 }
  0x9d   : > { %179 = vst [vmem:[#allocation1 + $0x5] ss:$9 sm:$0xff] %v166_v10 }
  0x9e   : > { %181 = vst [vmem:[#allocation1 + $0x6] ss:$9 sm:$0xff] %v167_v11 }
  0x9f   : > { %183 = vst [vmem:[#allocation1 + $0x7] ss:$9 sm:$0xff] %v168_v12 }
  0xa6   : > { %v184_v13 = vld [vmem:[#allocation1] sm:$0xff] }
  0xa7   : > { %186 = vperm.xlu0 %362, %v184_v13  }
 0x119   : > { %v187_v16 = vpop.permute.xlu0 %186 }
 0x11a   : > { %v190_v18 = vperm.slane %v187_v16, %v189_v15 }
 0x11c   : > { %v192_v19 = vadd.f32 %v190_v18, %v155_v17 }
 0x11e   : > { %194 = vst.msk [vmem:[#allocation2] sm:$0x1] %vm152_vm1, %v192_v19 }
 0x125   : > { %v198_v20 = vld [vmem:[#allocation2] sm:$0x1] }
 0x126   : > { %199 = vst.msk [vmem:[%s147_s17] sm:$0x1] %vm152_vm1, %v198_v20 }
 0x127   : > { %420 = shalt.err (!%p417_p13)
}
 0x128   : > { %300 = dma.vmem_to_hbm [thread:$0]  (%p540_p9), %s212_s18, 16, %s214_s22, %s201_s23  }
 0x129 PF: > { %s225_s30 = sand.u32 1, %s455_s6   ;;  %p307_p0 = pnand %p291_p12, %p547_p11 }
 0x12a   : > { %s226_s2 = scalar_lea.sflag [#allocation5], %s225_s30 }
 0x12b   : > { %p308_p1 = pneg %p307_p0 }
 0x12d   : > { %450 = dma.done.wait (%p308_p1), %s226_s2, 16  }
 0x12e   : > { %452 = vsyncadd (%p308_p1), %s226_s2, 4294967280  ;;  %s17_s11 = sadd.s32 1, %s475_s11   ;;  %s619_s6 = smov %s459_s7 }
 0x12f   : > { %p14_p2 = scmp.ge.s32.totalorder %s17_s11, 4   ;;  %s620_s7 = smov %s463_s8 }
 0x130   : > { %s621_s8 = smov %s545_s20  ;;  %s622_s9 = smov %s471_s10 }
 0x131   : > { %s623_s10 = smov %s625_s14  ;;  %16 = sbr.rel (!%p14_p2) target bundleno = 6 (0x6), region = 84 }
 0x136   :  { %231 = vsyncpa [#allocation4], 1 }
 0x137   :  { %233 = vsyncpa [#allocation4 + $0x1], 1 }
 0x138   :  { %234 = vsyncpa [#allocation5], 1 }
 0x139   :  { %236 = vsyncpa [#allocation5 + $0x1], 1 }

</bundles_post_ra>
